<compile_context>
chip_gen: v7x
topology: tpu7x:2x2x1
jax: 0.10.0
libtpu: 0.0.40
codegen_flags: <defaults>
</compile_context>

<pallas_src>
import functools

import jax
import jax.numpy as jnp
from jax.experimental import pallas as pl
from jax.experimental.pallas import tpu as pltpu


def _ssn_bn_kernel(gamma_ref, beta_ref, x_ref, o_ref, *, eps, inv_count):
    """Normalize one channel block.

    x_ref / o_ref: (N, cb, Fsub*T) block of the current channel group.
    gamma_ref / beta_ref: (cb, 1) per-channel affine params for this block.
    """
    x = x_ref[...].astype(jnp.float32)                       # (N, cb, L2)

    # One pass: per-channel sum and sum-of-squares.
    s = jnp.sum(x, axis=2, keepdims=True)                    # lane reduce (XLU)
    s = jnp.sum(s, axis=0, keepdims=True)                    # (1, cb, 1)
    ss = jnp.sum(x * x, axis=2, keepdims=True)
    ss = jnp.sum(ss, axis=0, keepdims=True)                  # (1, cb, 1)

    mean = s * inv_count
    var = ss * inv_count - mean * mean                       # biased variance
    inv_std = jax.lax.rsqrt(var + eps)

    gamma = gamma_ref[...].astype(jnp.float32)[None]         # (1, cb, 1)
    beta = beta_ref[...].astype(jnp.float32)[None]           # (1, cb, 1)

    # Fused affine: y = x * a + b  (2 vector ops per element, EUP rsqrt above).
    a = gamma * inv_std
    b = beta - mean * a
    o_ref[...] = (x * a + b).astype(o_ref.dtype)


def _choose_channel_block(CS, N, L2, itemsize):
    """Largest channel block (multiple of 8 dividing CS) that fits a
    conservative VMEM budget, preferring >=2 grid steps (megacore)."""
    budget = 24 * 1024 * 1024  # conservative: fits v7x / v5e scoped VMEM

    def vmem_est(cb):
        block = N * cb * L2
        # double-buffered input + output, plus ~2 full-size f32 temps.
        return 4 * block * itemsize + 2 * block * 4

    if CS % 8 != 0:
        # Sublane tiling requires the channel block to equal the full dim.
        return CS

    candidates = [cb for cb in range(8, CS + 1, 8) if CS % cb == 0]
    fitting = [cb for cb in candidates if vmem_est(cb) <= budget]
    if not fitting:
        return candidates[0]  # smallest aligned block; may still be large
    multi = [cb for cb in fitting if CS // cb >= 2]
    return max(multi) if multi else max(fitting)


def sub_spectral_norm(x, gamma, beta, S, eps=1e-5):
    """x: (N, C, F, T). gamma, beta: (C*S,) affine params."""
    N, C, F, T = x.shape
    assert F % S == 0, "F must be divisible by S"
    CS = C * S
    Fsub = F // S
    L2 = Fsub * T
    count = N * L2  # number of reduced elements per channel

    # Free, contiguous reshapes only (no HBM transposes):
    #   (N, C, F, T) -> (N, C*S, F//S, T) -> (N, CS, Fsub*T)
    x3 = x.reshape(N, CS, L2)
    g2 = gamma.reshape(CS, 1)
    b2 = beta.reshape(CS, 1)

    cb = _choose_channel_block(CS, N, L2, jnp.dtype(x.dtype).itemsize)
    grid = (CS // cb,)

    kernel = functools.partial(
        _ssn_bn_kernel, eps=float(eps), inv_count=1.0 / float(count))

    y3 = pl.pallas_call(
        kernel,
        out_shape=jax.ShapeDtypeStruct((N, CS, L2), x.dtype),
        grid_spec=pltpu.PrefetchScalarGridSpec(
            num_scalar_prefetch=0,
            grid=grid,
            in_specs=[
                # gamma/beta: small per-block tiles; DMA hidden by pipelining.
                pl.BlockSpec((cb, 1), lambda i: (i, 0)),
                pl.BlockSpec((cb, 1), lambda i: (i, 0)),
                # x: full batch and full reduced lane axis, blocked channels.
                pl.BlockSpec((N, cb, L2), lambda i: (0, i, 0)),
            ],
            out_specs=pl.BlockSpec((N, cb, L2), lambda i: (0, i, 0)),
        ),
        compiler_params=pltpu.CompilerParams(
            dimension_semantics=("parallel",),
            vmem_limit_bytes=32 * 1024 * 1024,
        ),
    )(g2, b2, x3)

    # Free reshape back to the original NCHW view.
    return y3.reshape(N, C, F, T)


def _reference(x, gamma, beta, S, eps=1e-5):
    """Pure-JAX reference mirroring the PyTorch module."""
    N, C, F, T = x.shape
    CS = C * S
    xr = x.reshape(N, CS, F // S, T).astype(jnp.float32)
    mean = jnp.mean(xr, axis=(0, 2, 3), keepdims=True)
    var = jnp.mean((xr - mean) ** 2, axis=(0, 2, 3), keepdims=True)
    y = (xr - mean) / jnp.sqrt(var + eps)
    y = y * gamma.reshape(1, CS, 1, 1) + beta.reshape(1, CS, 1, 1)
    return y.reshape(N, C, F, T).astype(x.dtype)


if __name__ == "__main__":
    # Small shapes consistent with the module: N=2, C=8, S=2, F=16, T=16.
    # CS = 16 -> 2 parallel grid steps (exercises megacore path); lane dim
    # Fsub*T = 128 (lane-dense stores).
    N, C, F, T = 2, 8, 16, 16
    S = 2
    CS = C * S

    key = jax.random.PRNGKey(0)
    kx, kg, kb = jax.random.split(key, 3)
    x = jax.random.normal(kx, (N, C, F, T), dtype=jnp.float32)
    # BatchNorm2d init is weight=1, bias=0; perturb slightly so the affine
    # path is exercised.
    gamma = jnp.ones((CS,), jnp.float32) + 0.1 * jax.random.normal(
        kg, (CS,), dtype=jnp.float32)
    beta = 0.1 * jax.random.normal(kb, (CS,), dtype=jnp.float32)

    y = sub_spectral_norm(x, gamma, beta, S)
    y = jax.block_until_ready(y)

    y_ref = _reference(x, gamma, beta, S)
    assert y.shape == (N, C, F, T)
    assert jnp.allclose(y, y_ref, atol=1e-4, rtol=1e-4), "mismatch vs reference"

    print("KERNEL_OK")
</pallas_src>

<mosaic_0001>
module attributes {stable_mosaic.version = 11 : i64} {
  func.func @_ssn_bn_kernel(%arg0: i32, %arg1: memref<8x1xf32, #tpu.memory_space<vmem>>, %arg2: memref<8x1xf32, #tpu.memory_space<vmem>>, %arg3: memref<2x8x128xf32, #tpu.memory_space<vmem>>, %arg4: memref<2x8x128xf32, #tpu.memory_space<vmem>>) attributes {dimension_semantics = [#tpu.dimension_semantics<parallel>], iteration_bounds = array<i64: 2>, scalar_prefetch = 0 : i64, scratch_operands = 0 : i64, tpu.core_type = #tpu.core_type<tc>, window_params = [{transform_indices = @transform_0, window_bounds = array<i64: 8, 1>}, {transform_indices = @transform_1, window_bounds = array<i64: 8, 1>}, {transform_indices = @transform_2, window_bounds = array<i64: 2, 8, 128>}, {transform_indices = @transform_3, window_bounds = array<i64: 2, 8, 128>}]} {
    %c0 = arith.constant 0 : index
    %c0_0 = arith.constant 0 : index
    %c0_1 = arith.constant 0 : index
    %0 = vector.load %arg3[%c0, %c0_0, %c0_1] : memref<2x8x128xf32, #tpu.memory_space<vmem>>, vector<2x8x128xf32>
    %cst = arith.constant dense<0.000000e+00> : vector<2x8xf32>
    %1 = vector.multi_reduction <add>, %0, %cst [2] : vector<2x8x128xf32> to vector<2x8xf32>
    %2 = vector.shape_cast %1 : vector<2x8xf32> to vector<2x8x1xf32>
    %cst_2 = arith.constant dense<0.000000e+00> : vector<8x1xf32>
    %3 = vector.multi_reduction <add>, %2, %cst_2 [0] : vector<2x8x1xf32> to vector<8x1xf32>
    %4 = vector.shape_cast %3 : vector<8x1xf32> to vector<1x8x1xf32>
    %5 = arith.mulf %0, %0 : vector<2x8x128xf32>
    %cst_3 = arith.constant dense<0.000000e+00> : vector<2x8xf32>
    %6 = vector.multi_reduction <add>, %5, %cst_3 [2] : vector<2x8x128xf32> to vector<2x8xf32>
    %7 = vector.shape_cast %6 : vector<2x8xf32> to vector<2x8x1xf32>
    %cst_4 = arith.constant dense<0.000000e+00> : vector<8x1xf32>
    %8 = vector.multi_reduction <add>, %7, %cst_4 [0] : vector<2x8x1xf32> to vector<8x1xf32>
    %9 = vector.shape_cast %8 : vector<8x1xf32> to vector<1x8x1xf32>
    %cst_5 = arith.constant 3.906250e-03 : f32
    %10 = vector.broadcast %cst_5 : f32 to vector<1x8x1xf32>
    %11 = arith.mulf %4, %10 : vector<1x8x1xf32>
    %cst_6 = arith.constant 3.906250e-03 : f32
    %12 = vector.broadcast %cst_6 : f32 to vector<1x8x1xf32>
    %13 = arith.mulf %9, %12 : vector<1x8x1xf32>
    %14 = arith.mulf %11, %11 : vector<1x8x1xf32>
    %15 = arith.subf %13, %14 : vector<1x8x1xf32>
    %cst_7 = arith.constant 9.99999974E-6 : f32
    %16 = vector.broadcast %cst_7 : f32 to vector<1x8x1xf32>
    %17 = arith.addf %15, %16 : vector<1x8x1xf32>
    %18 = math.rsqrt %17 : vector<1x8x1xf32>
    %c0_8 = arith.constant 0 : index
    %c0_9 = arith.constant 0 : index
    %19 = vector.load %arg1[%c0_8, %c0_9] : memref<8x1xf32, #tpu.memory_space<vmem>>, vector<8x1xf32>
    %20 = vector.shape_cast %19 : vector<8x1xf32> to vector<1x8x1xf32>
    %c0_10 = arith.constant 0 : index
    %c0_11 = arith.constant 0 : index
    %21 = vector.load %arg2[%c0_10, %c0_11] : memref<8x1xf32, #tpu.memory_space<vmem>>, vector<8x1xf32>
    %22 = vector.shape_cast %21 : vector<8x1xf32> to vector<1x8x1xf32>
    %23 = arith.mulf %20, %18 : vector<1x8x1xf32>
    %24 = arith.mulf %11, %23 : vector<1x8x1xf32>
    %25 = arith.subf %22, %24 : vector<1x8x1xf32>
    %26 = vector.broadcast %23 : vector<1x8x1xf32> to vector<2x8x128xf32>
    %27 = arith.mulf %0, %26 : vector<2x8x128xf32>
    %28 = vector.broadcast %25 : vector<1x8x1xf32> to vector<2x8x128xf32>
    %29 = arith.addf %27, %28 : vector<2x8x128xf32>
    %c0_12 = arith.constant 0 : index
    %c0_13 = arith.constant 0 : index
    %c0_14 = arith.constant 0 : index
    %30 = vector.load %arg4[%c0_12, %c0_13, %c0_14] : memref<2x8x128xf32, #tpu.memory_space<vmem>>, vector<2x8x128xf32>
    tpu.vector_store %arg4[%c0_12, %c0_13, %c0_14], %29 {strides = array<i32>} : memref<2x8x128xf32, #tpu.memory_space<vmem>>, vector<2x8x128xf32>,
    return
  }
  func.func @transform_0(%arg0: i32) -> (i32, i32) {
    %c0_i32 = arith.constant 0 : i32
    %c0_i32_0 = arith.constant 0 : i32
    return %arg0, %c0_i32 : i32, i32
  }
  func.func @transform_1(%arg0: i32) -> (i32, i32) {
    %c0_i32 = arith.constant 0 : i32
    %c0_i32_0 = arith.constant 0 : i32
    return %arg0, %c0_i32 : i32, i32
  }
  func.func @transform_2(%arg0: i32) -> (i32, i32, i32) {
    %c0_i32 = arith.constant 0 : i32
    %c0_i32_0 = arith.constant 0 : i32
    %c0_i32_1 = arith.constant 0 : i32
    return %c0_i32, %arg0, %c0_i32_0 : i32, i32, i32
  }
  func.func @transform_3(%arg0: i32) -> (i32, i32, i32) {
    %c0_i32 = arith.constant 0 : i32
    %c0_i32_0 = arith.constant 0 : i32
    %c0_i32_1 = arith.constant 0 : i32
    return %c0_i32, %arg0, %c0_i32_0 : i32, i32, i32
  }
}

</mosaic_0001>

<bundles_post_ra>
// kernel: tpu_custom_call.1
= control target key start
LH: loop header
LB: loop body
LE: loop exit
PB: predicated region body
PF: predicated region fallthrough
CT: control target
= control target key end

     0   :  { %8 = vsyncpa [#allocation4], 0  ;;  %s661_s0 = inlined_call_operand.vmem [shape: f32[16,1], index: 0, kind: input, shape index: {}]   ;;  %s662_s1 = inlined_call_operand.vmem [shape: f32[16,1], index: 1, kind: input, shape index: {}]   ;;  %s663_s2 = inlined_call_operand.vmem [shape: f32[2,16,128], index: 2, kind: input, shape index: {}]   ;;  %s664_s3 = inlined_call_operand.hbm [shape: f32[2,16,128], index: 3, kind: output, shape index: {}]  }
   0x1   :  { %10 = vsyncpa [#allocation4 + $0x1], 0  ;;  %s537_s12 = smov 0   ;;  %s539_s13 = smov 0  }
   0x2   :  { %s541_s14 = smov 0   ;;  %s543_s15 = smov 0  }
   0x3 LB: > { %s558_s16 = sadd.s32 4294967295, %s510_s15   ;;  %s387_s17 = sadd.s32 4294967294, %s510_s15   ;;  %s510_s15 = sphi %s543_s15, %s670_s15   ;;  %s506_s14 = sphi %s541_s14, %s669_s14   ;;  %s502_s13 = sphi %s539_s13, %s668_s13   ;;  %s498_s12 = sphi %s537_s12, %s667_s12  }
   0x4   : > { %s562_s18 = sadd.s32 1, %s510_s15   ;;  %s75_s19 = sadd.s32 1, %s506_s14 }
   0x5   : > { %s72_s20 = ssub.s32 %s510_s15, %s562_s18  ;;  %p82_p0 = scmp.ne.s32.totalorder %s506_s14, %s502_s13 }
   0x6   : > { %p73_p1 = scmp.eq.s32.totalorder %s72_s20, 0  ;;  %p83_p2 = scmp.eq.s32.totalorder %s510_s15, 0 }
   0x7   : > { %p112_p3 = scmp.eq.s32.totalorder %s558_s16, 1  ;;  %p117_p4 = scmp.ne.s32.totalorder %s502_s13, %s498_s12 }
   0x8   : > { %s574_s21 = scalar_select %p73_p1, %s506_s14, %s75_s19  }
   0x9   : > { %p84_p5 = por %p83_p2, %p82_p0  ;;  %p576_p6 = por %p112_p3, %p82_p0 }
   0xa   : > { %p118_p7 = scmp.eq.s32.totalorder %s387_s17, 1  ;;  %p389_p9 = scmp.ge.s32.totalorder %s510_s15, 2 }
   0xc   : > { %p580_p8 = por %p118_p7, %p117_p4  ;;  %134 = sbr.rel (%p389_p9) target bundleno = 26 (0x1a), region = 16 }
  0x13   : > { %151 = sbr.rel (!%p84_p5) target bundleno = 26 (0x1a), region = 28  ;;  %s153_s24 = sand.u32 (%p84_p5), 1, %s506_s14  }
  0x14   : > { %s391_s25 = sshll.u32 (%p84_p5), %s510_s15, 3  ;;  %s390_s26 = sshll.u32 (%p84_p5), %s153_s24, 4 }
  0x15   : > { %s157_s29 = scalar_lea.vmem (%p84_p5), %s663_s2, %s391_s25  ;;  %s155_s30 = scalar_lea.vmem (%p84_p5), [#allocation2], %s390_s26 }
  0x16   : > { %v187_v0 = vld [vmem:[%s157_s29] sm:$0xff] (%p84_p5)  ;;  %v189_v1 = vld [vmem:[%s157_s29 + $0x10] sm:$0xff] (%p84_p5) }
  0x17   : > { %188 = vst [vmem:[%s155_s30] sm:$0xff] (%p84_p5), %v187_v0  ;;  %190 = vst [vmem:[%s155_s30 + $0x8] sm:$0xff] (%p84_p5), %v189_v1 }
  0x1a PF: > { %p392_p10 = scmp.ge.s32.totalorder %s510_s15, 1  ;;  %p195_p11 = scmp.lt.s32.totalorder %s510_s15, 3 }
  0x1c   : > { %p196_p12 = pnand %p392_p10, %p195_p11 }
  0x1d   : > { %s202_s4 = sand.u32 (!%p196_p12), 1, %s502_s13   ;;  %v512_v6 = vmov (!%p196_p12), 0   ;;  %p233_p13 = scmp.lt.s32.totalorder (!%p196_p12), %s558_s16, 1 }
  0x1e   : > { %199 = sbr.rel (%p196_p12) target bundleno = 352 (0x160), region = 66  ;;  %s597_s5 = sshll.u32 (!%p196_p12), %s202_s4, 4  ;;  %444 = vset.pattern.permute.xlu0 (!%p196_p12), %v512_v6  ;;  %445 = vset.pattern.permute.xlu1 (!%p196_p12), %v512_v6 }
  0x1f   : > { %s204_s6 = scalar_lea.vmem (!%p196_p12), [#allocation2], %s597_s5  ;;  %s232_s24 = scalar_lea.vmem (!%p196_p12), [#allocation3], %s597_s5 }
  0x20   : > { %v241_v2 = vld [vmem:[%s204_s6] sm:$0xff] (!%p196_p12)  ;;  %v242_v3 = vld [vmem:[%s204_s6 + $0x8] sm:$0xff] (!%p196_p12)  ;;  %s295_s25 = sshll.u32 (!%p196_p12), %s232_s24, 4  ;;  %s398_s26 = sshll.u32 (!%p196_p12), %s558_s16, 7  ;;  %s610_s25 = int_to_ptr.vmem [resolvable:$true] %s295_s25 }
  0x21   : > { %243 = vadd.xlane.f32.xlu0 (!%p196_p12), %v241_v2  ;;  %v248_v4 = vmul.f32 (!%p196_p12), %v241_v2, %v241_v2  ;;  %v249_v5 = vmul.f32 (!%p196_p12), %v242_v3, %v242_v3  ;;  %s615_s29 = scalar_lea.hbm (!%p196_p12), %s664_s3, %s398_s26  ;;  %s619_s30 = scalar_lea.sflag (!%p196_p12), [#allocation4], %s202_s4 }
  0x22   : > { %s513_s5 = smov (!%p196_p12), [#allocation3]  }
  0x23   : > { %250 = vadd.xlane.f32.xlu1 (!%p196_p12), %v248_v4  ;;  %s452_s6 = sshll.u32 (!%p196_p12), %s513_s5, 4  ;;  %s453_s6 = int_to_ptr.vmem [resolvable:$false] %s452_s6 }
  0x24   : > { %p455_p3 = scmp.lt.s32.totalorder (!%p196_p12), %s610_s25, %s453_s6 }
  0x25   : > { %245 = vadd.xlane.f32.xlu0 %v242_v3  ;;  %s234_s7 = scalar_select %p233_p13, %s558_s16, 1 }
  0x26   : > { %s448_s16 = scalar_lea.vmem %s610_s25, 256 }
  0x27   : > { %252 = vadd.xlane.f32.xlu1 %v249_v5  ;;  %s395_s8 = sshll.u32 %s234_s7, 3  ;;  %p449_p0 = scmp.ne.s32.totalorder %s610_s25, %s448_s16 }
  0x28   : > { %s236_s11 = scalar_lea.vmem %s661_s0, %s395_s8  ;;  %s240_s20 = scalar_lea.vmem %s662_s1, %s395_s8 }
  0x29   : > { %v261_v18 = vld [vmem:[%s236_s11] sm:$0xff]  ;;  %p450_p1 = pnand %p449_p0, %p576_p6  ;;  %s454_s7 = scalar_lea.vmem %s453_s6, 512 }
  0x2a   : > { %v262_v21 = vld [vmem:[%s240_s20] sm:$0xff]  ;;  %p456_p4 = scmp.lt.s32.totalorder %s454_s7, %s448_s16 }
  0x2b   : > { %p451_p2 = pneg %p450_p1 }
  0x2c   : > { %p457_p5 = por %p456_p4, %p455_p3 }
  0x2e   : > { %p458_p7 = pnand %p457_p5, %p451_p2 }
  0xae   : > { %v244_v7 = vpop.xlane.xlu0 %243 }
  0xb0   : > { %v251_v8 = vpop.xlane.xlu1 %250 }
  0xb2   : > { %v246_v9 = vpop.xlane.xlu0 %245 }
  0xb3   : > { %v247_v10 = vadd.f32 %v246_v9, %v244_v7 }
  0xb4   : > { %v253_v11 = vpop.xlane.xlu1 %252 }
  0xb5   : > { %v255_v12 = vmul.f32 0.00390625, %v247_v10  ;;  %v254_v13 = vadd.f32 %v253_v11, %v251_v8 }
  0xb7   : > { %v257_v14 = vmul.f32 %v255_v12, %v255_v12  ;;  %v256_v15 = vmul.f32 0.00390625, %v254_v13 }
  0xb9   : > { %v258_v16 = vsub.f32 %v256_v15, %v257_v14 }
  0xbb   : > { %v259_v17 = vadd.f32 1e-05, %v258_v16 }
  0xbd   : > { %446 = vrsqrt.f32 %v259_v17 }
  0xc7   : > { %v447_v19 = vpop.eup %446 }
  0xc8   : > { %v263_v20 = vmul.f32 %v447_v19, %v261_v18 }
  0xca   : > { %268 = vperm.xlu0 %444, %v263_v20   ;;  %v264_v22 = vmul.f32 %v263_v20, %v255_v12 }
  0xcc   : > { %v265_v23 = vsub.f32 %v262_v21, %v264_v22 }
  0xce   : > { %275 = vperm.xlu1 %445, %v265_v23  }
 0x149   : > { %v269_v24 = vpop.permute.xlu0 %268 }
 0x14a   : > { %v271_v25 = vmul.f32 %v269_v24, %v241_v2  ;;  %v272_v26 = vmul.f32 %v269_v24, %v242_v3 }
 0x14d   : > { %v276_v27 = vpop.permute.xlu1 %275 }
 0x14e   : > { %v278_v28 = vadd.f32 %v276_v27, %v271_v25  ;;  %v279_v29 = vadd.f32 %v276_v27, %v272_v26 }
 0x150   : > { %280 = vst [vmem:[%s232_s24] sm:$0xff] %v278_v28  ;;  %281 = vst [vmem:[%s232_s24 + $0x8] sm:$0xff] %v279_v29 }
 0x151   : > { %461 = shalt.err (!%p458_p7)
}
 0x152   : > { %s462_s4 = scalar_lea.hbm %s615_s29, 256  ;;  %s466_s10 = scalar_lea.hbm %s664_s3, 512 }
 0x153   : > { %p463_p10 = scmp.ne.s32.totalorder %s615_s29, %s462_s4  ;;  %p467_p13 = scmp.lt.u32.totalorder %s615_s29, %s664_s3 }
 0x154   : > { %p468_p0 = scmp.lt.u32.totalorder %s466_s10, %s462_s4  ;;  %p470_p2 = scmp.lt.u32.totalorder %s462_s4, %s615_s29 }
 0x155   : > { %p464_p11 = pnand %p463_p10, %p576_p6 }
 0x156   : > { %p469_p1 = por %p468_p0, %p467_p13 }
 0x157   : > { %p465_p12 = pneg %p464_p11 }
 0x158   : > { %p471_p3 = por %p470_p2, %p469_p1 }
 0x15a   : > { %p472_p4 = pnand %p471_p3, %p465_p12 }
 0x15c   : > { %475 = shalt.err (!%p472_p4)
}
 0x15d   : > { %s514_s19 = smov 128   ;;  %s515_s20 = smov 256  }
 0x15e   : > { %s516_s24 = smov 8  }
 0x15f   : > { %401 = dma.vmem_to_hbm [thread:$0]  (%p576_p6), %s610_s25, 256, %s615_s29, %s619_s30, %s514_s19, %s515_s20, %s516_s24  }
 0x160 PF: > { %s310_s26 = sand.u32 1, %s498_s12   ;;  %p404_p5 = pnand %p389_p9, %p580_p8 }
 0x161   : > { %s311_s27 = scalar_lea.sflag [#allocation4], %s310_s26 }
 0x162   : > { %493 = dma.done.wait (!%p404_p5), %s311_s27, 256  }
 0x163   : > { %495 = vsyncadd (!%p404_p5), %s311_s27, 4294967040  ;;  %p13_p7 = scmp.ge.s32.totalorder %s562_s18, 4   ;;  %s667_s12 = smov %s502_s13 }
 0x164   : > { %s668_s13 = smov %s506_s14  ;;  %s669_s14 = smov %s574_s21 }
 0x165   : > { %s670_s15 = smov %s562_s18  ;;  %15 = sbr.rel (!%p13_p7) target bundleno = 3 (0x3), region = 116 }
 0x16c   :  { %316 = vsyncpa [#allocation4], 1 }
 0x16d   :  { %318 = vsyncpa [#allocation4 + $0x1], 1 }

</bundles_post_ra>
